<compile_context>
chip_gen: v5e
topology: v5e:2x2
jax: 0.10.0
libtpu: 0.0.40
codegen_flags: <defaults>
</compile_context>

<pallas_src>
import functools

import jax
import jax.numpy as jnp
import numpy as np
from jax import lax
from jax.experimental import pallas as pl
from jax.experimental.pallas import tpu as pltpu


def _layernorm(x, gamma, beta, eps=1e-5):
    mean = jnp.mean(x, axis=-1, keepdims=True)
    var = jnp.mean(jnp.square(x - mean), axis=-1, keepdims=True)
    return (x - mean) * lax.rsqrt(var + eps) * gamma + beta


def _vmem_limit_bytes():
    """Generation-aware VMEM ceiling with headroom for Mosaic internal scratch."""
    cap = 64 * 1024 * 1024
    try:
        info = pltpu.get_tpu_info()
        cap = int(getattr(info, "vmem_capacity_bytes", 0)) or cap
    except Exception:
        pass
    return max(32 * 1024 * 1024, min(cap - 12 * 1024 * 1024, 110 * 1024 * 1024))


# --------------------------------------------------------------------------- #
# Prologue: fused QKV projection, once per batch element.
# --------------------------------------------------------------------------- #
def qkv_proj_kernel(mm_dtype, x_ref, wqkv_ref, bqkv_ref, q_ref, kv_ref):
    E = x_ref.shape[-1]
    x = x_ref[...].astype(mm_dtype)                                 # (T, E)
    q = (jnp.dot(x, wqkv_ref[:, :E], preferred_element_type=jnp.float32)
         + bqkv_ref[:, :E])                                         # (T, E) f32
    kv = (jnp.dot(x, wqkv_ref[:, E:], preferred_element_type=jnp.float32)
          + bqkv_ref[:, E:])                                        # (T, 2E) f32
    q_ref[...] = q.astype(q_ref.dtype)
    kv_ref[...] = kv.astype(kv_ref.dtype)


# --------------------------------------------------------------------------- #
# Main kernel: attention (Wo fused into the head loop) + residual/LN + MLP + LN.
# --------------------------------------------------------------------------- #
def nanogpt_block_kernel(nheads, mm_dtype, mlp_chunk,
                         x_ref, q_ref, kv_ref,
                         wo_ref, bo_ref,
                         ln1_g_ref, ln1_b_ref,
                         w1_ref, b1_ref, w2_ref, b2_ref,
                         ln2_g_ref, ln2_b_ref,
                         o_ref):
    TQ, E = x_ref.shape
    T = kv_ref.shape[0]
    hd = E // nheads
    scale = 1.0 / float(np.sqrt(hd))

    x_tile = x_ref[...]                                             # (TQ, E) f32

    # --- multi-head attention (non-causal; forward passes no mask) ----------
    # Wo is fused into the head loop so every MXU output is E lanes wide:
    # concat_h(head_h) @ Wo == sum_h head_h @ Wo[h*hd:(h+1)*hd, :]
    attn = jnp.zeros((TQ, E), jnp.float32)
    for h in range(nheads):                                         # small static int
        sl = slice(h * hd, (h + 1) * hd)
        qh = q_ref[:, sl]                                           # (TQ, hd) mm_dtype
        kh = kv_ref[:, sl]                                          # (T, hd)  mm_dtype
        vh = kv_ref[:, E + h * hd: E + (h + 1) * hd]                # (T, hd)  mm_dtype
        # Contract over hd without materializing kh.T
        s = lax.dot_general(qh, kh, (((1,), (1,)), ((), ())),
                            preferred_element_type=jnp.float32) * scale
        s = s - jnp.max(s, axis=-1, keepdims=True)
        p = jnp.exp(s)
        p = p * pl.reciprocal(jnp.sum(p, axis=-1, keepdims=True), approx=True)
        hv = jnp.dot(p.astype(mm_dtype), vh,
                     preferred_element_type=jnp.float32)            # (TQ, hd) f32
        attn = attn + jnp.dot(hv.astype(mm_dtype), wo_ref[sl, :],
                              preferred_element_type=jnp.float32)   # (TQ, E)  f32
    attn = attn + bo_ref[...]

    # --- residual + LayerNorm 1 ----------------------------------------------
    h1 = _layernorm(x_tile + attn, ln1_g_ref[...], ln1_b_ref[...])

    # --- 2-layer MLP ----------------------------------------------------------
    # TODO(synk): cMLP activation not shown in source; using tanh-approx GELU
    # (nanoGPT-style).
    H = w1_ref.shape[1]
    h1_mm = h1.astype(mm_dtype)
    if mlp_chunk is None or mlp_chunk >= H:
        m = (jnp.dot(h1_mm, w1_ref[...], preferred_element_type=jnp.float32)
             + b1_ref[...])
        m = jax.nn.gelu(m, approximate=True)                        # f32 elementwise
        mlp_out = (jnp.dot(m.astype(mm_dtype), w2_ref[...],
                           preferred_element_type=jnp.float32)
                   + b2_ref[...])
    else:
        # VMEM-tight fallback (e.g. v7x): process the hidden dim in chunks.
        assert H % mlp_chunk == 0
        acc = jnp.zeros((TQ, E), jnp.float32)
        for c in range(H // mlp_chunk):
            csl = slice(c * mlp_chunk, (c + 1) * mlp_chunk)
            m = (jnp.dot(h1_mm, w1_ref[:, csl],
                         preferred_element_type=jnp.float32) + b1_ref[:, csl])
            m = jax.nn.gelu(m, approximate=True)
            acc = acc + jnp.dot(m.astype(mm_dtype), w2_ref[csl, :],
                                preferred_element_type=jnp.float32)
        mlp_out = acc + b2_ref[...]

    # --- residual + LayerNorm 2 ----------------------------------------------
    h2 = _layernorm(h1 + mlp_out, ln2_g_ref[...], ln2_b_ref[...])
    o_ref[...] = h2.astype(o_ref.dtype)


# --------------------------------------------------------------------------- #
# Wrapper
# --------------------------------------------------------------------------- #
def nanogpt_block(x, params, nheads, *, q_tile=None,
                  matmul_dtype=jnp.bfloat16, mlp_chunk=None):
    B, T, E = x.shape
    H = params["w1"].shape[1]
    TQ = q_tile or T
    assert T % TQ == 0, "T must be divisible by the query tile size"
    n_tq = T // TQ
    mm = matmul_dtype
    vmem_limit = _vmem_limit_bytes()

    # Host-side packing + pre-cast of weights to matmul_dtype (biases stay f32).
    wqkv = jnp.concatenate(
        [params["wq"], params["wk"], params["wv"]], axis=1).astype(mm)
    bqkv = jnp.concatenate([params["bq"], params["bk"], params["bv"]], axis=1)
    wo = params["wo"].astype(mm)
    w1 = params["w1"].astype(mm)
    w2 = params["w2"].astype(mm)

    # ---- prologue: fused QKV projection, grid over batch ----
    q, kv = pl.pallas_call(
        functools.partial(qkv_proj_kernel, mm),
        out_shape=(jax.ShapeDtypeStruct((B, T, E), mm),
                   jax.ShapeDtypeStruct((B, T, 2 * E), mm)),
        grid=(B,),
        in_specs=[
            pl.BlockSpec((None, T, E), lambda b: (b, 0, 0)),
            pl.BlockSpec((E, 3 * E), lambda b: (0, 0)),
            pl.BlockSpec((1, 3 * E), lambda b: (0, 0)),
        ],
        out_specs=(pl.BlockSpec((None, T, E), lambda b: (b, 0, 0)),
                   pl.BlockSpec((None, T, 2 * E), lambda b: (b, 0, 0))),
        compiler_params=pltpu.CompilerParams(
            dimension_semantics=("parallel",),
            vmem_limit_bytes=vmem_limit),
    )(x, wqkv, bqkv)

    def full_spec(shape):
        return pl.BlockSpec(shape, lambda b, t: (0,) * len(shape))

    kernel = functools.partial(nanogpt_block_kernel, nheads, mm, mlp_chunk)
    return pl.pallas_call(
        kernel,
        out_shape=jax.ShapeDtypeStruct((B, T, E), x.dtype),
        grid=(B, n_tq),
        in_specs=[
            pl.BlockSpec((None, TQ, E), lambda b, t: (b, t, 0)),     # x query tile
            pl.BlockSpec((None, TQ, E), lambda b, t: (b, t, 0)),     # Q tile (mm dtype)
            pl.BlockSpec((None, T, 2 * E), lambda b, t: (b, 0, 0)),  # K|V full seq (mm dtype)
            full_spec((E, E)), full_spec((1, E)),                    # Wo, bo
            full_spec((1, E)), full_spec((1, E)),                    # ln1 gamma, beta
            full_spec((E, H)), full_spec((1, H)),                    # W1, b1
            full_spec((H, E)), full_spec((1, E)),                    # W2, b2
            full_spec((1, E)), full_spec((1, E)),                    # ln2 gamma, beta
        ],
        out_specs=pl.BlockSpec((None, TQ, E), lambda b, t: (b, t, 0)),
        compiler_params=pltpu.CompilerParams(
            dimension_semantics=("parallel", "parallel"),
            vmem_limit_bytes=vmem_limit),
    )(x, q, kv,
      wo, params["bo"],
      params["ln1_g"], params["ln1_b"],
      w1, params["b1"], w2, params["b2"],
      params["ln2_g"], params["ln2_b"])


# --------------------------------------------------------------------------- #
# Params + pure-JAX reference
# --------------------------------------------------------------------------- #
def make_params(key, E, H):
    keys = jax.random.split(key, 6)
    init = lambda k, shape: (0.02 * jax.random.normal(k, shape)).astype(jnp.float32)
    return {
        "wq": init(keys[0], (E, E)), "bq": jnp.zeros((1, E), jnp.float32),
        "wk": init(keys[1], (E, E)), "bk": jnp.zeros((1, E), jnp.float32),
        "wv": init(keys[2], (E, E)), "bv": jnp.zeros((1, E), jnp.float32),
        "wo": init(keys[3], (E, E)), "bo": jnp.zeros((1, E), jnp.float32),
        "ln1_g": jnp.ones((1, E), jnp.float32), "ln1_b": jnp.zeros((1, E), jnp.float32),
        "w1": init(keys[4], (E, H)), "b1": jnp.zeros((1, H), jnp.float32),
        "w2": init(keys[5], (H, E)), "b2": jnp.zeros((1, E), jnp.float32),
        "ln2_g": jnp.ones((1, E), jnp.float32), "ln2_b": jnp.zeros((1, E), jnp.float32),
    }


def reference_block(x, p, nheads):
    """Pure-JAX reference matching the PyTorch forward semantics (post-LN, no mask)."""
    B, T, E = x.shape
    hd = E // nheads
    q = x @ p["wq"] + p["bq"]
    k = x @ p["wk"] + p["bk"]
    v = x @ p["wv"] + p["bv"]
    q = q.reshape(B, T, nheads, hd).transpose(0, 2, 1, 3)
    k = k.reshape(B, T, nheads, hd).transpose(0, 2, 1, 3)
    v = v.reshape(B, T, nheads, hd).transpose(0, 2, 1, 3)
    s = jnp.einsum("bhtd,bhsd->bhts", q, k) / np.sqrt(hd)
    a = jax.nn.softmax(s, axis=-1)
    av = jnp.einsum("bhts,bhsd->bhtd", a, v).transpose(0, 2, 1, 3).reshape(B, T, E)
    attn_out = av @ p["wo"] + p["bo"]

    def ln(y, g, b, eps=1e-5):
        mu = y.mean(-1, keepdims=True)
        var = ((y - mu) ** 2).mean(-1, keepdims=True)
        return (y - mu) * jax.lax.rsqrt(var + eps) * g + b

    h = ln(x + attn_out, p["ln1_g"], p["ln1_b"])
    m = jax.nn.gelu(h @ p["w1"] + p["b1"], approximate=True) @ p["w2"] + p["b2"]
    return ln(h + m, p["ln2_g"], p["ln2_b"])


if __name__ == "__main__":
    # NOTE: attention is non-causal (forward passes no mask) and the block is
    # post-LN, exactly matching the provided PyTorch forward.
    B, T, E, NH, H = 2, 16, 32, 4, 64
    TQ = 8   # two query tiles per batch element, exercises the T-tiled grid
    key = jax.random.PRNGKey(0)
    kx, kp = jax.random.split(key)
    x = jax.random.normal(kx, (B, T, E), dtype=jnp.float32)
    params = make_params(kp, E, H)

    ref = reference_block(x, params, NH)

    # f32 matmul path (closest to module semantics).
    out_f32 = jax.block_until_ready(
        nanogpt_block(x, params, NH, q_tile=TQ, matmul_dtype=jnp.float32))
    np.testing.assert_allclose(np.asarray(out_f32), np.asarray(ref),
                               atol=1e-3, rtol=1e-3)

    # Default bf16-matmul path (MXU-native); f32 accumulation + f32 elementwise.
    out_bf16 = jax.block_until_ready(nanogpt_block(x, params, NH, q_tile=TQ))
    np.testing.assert_allclose(np.asarray(out_bf16), np.asarray(ref),
                               atol=2e-2, rtol=2e-2)

    # Exercise the VMEM-tight MLP-chunk fallback path as well.
    out_chunk = jax.block_until_ready(
        nanogpt_block(x, params, NH, q_tile=TQ, mlp_chunk=32))
    np.testing.assert_allclose(np.asarray(out_chunk), np.asarray(ref),
                               atol=2e-2, rtol=2e-2)

    print("KERNEL_OK")
</pallas_src>

<mosaic_0001>
module attributes {stable_mosaic.version = 11 : i64} {
  func.func @qkv_proj_kernel(%arg0: i32, %arg1: memref<1x16x32xf32, #tpu.memory_space<vmem>>, %arg2: memref<32x96xf32, #tpu.memory_space<vmem>>, %arg3: memref<1x96xf32, #tpu.memory_space<vmem>>, %arg4: memref<1x16x32xf32, #tpu.memory_space<vmem>>, %arg5: memref<1x16x64xf32, #tpu.memory_space<vmem>>) attributes {dimension_semantics = [#tpu.dimension_semantics<parallel>], iteration_bounds = array<i64: 2>, scalar_prefetch = 0 : i64, scratch_operands = 0 : i64, tpu.core_type = #tpu.core_type<tc>, window_params = [{transform_indices = @transform_0, window_bounds = array<i64: 1, 16, 32>}, {pipeline_mode = #tpu.pipeline_mode<synchronous>, transform_indices = @transform_1, window_bounds = array<i64: 32, 96>}, {pipeline_mode = #tpu.pipeline_mode<synchronous>, transform_indices = @transform_2, window_bounds = array<i64: 1, 96>}, {transform_indices = @transform_3, window_bounds = array<i64: 1, 16, 32>}, {transform_indices = @transform_4, window_bounds = array<i64: 1, 16, 64>}]} {
    %c0 = arith.constant 0 : index
    %c0_0 = arith.constant 0 : index
    %c0_1 = arith.constant 0 : index
    %0 = vector.load %arg1[%c0, %c0_0, %c0_1] : memref<1x16x32xf32, #tpu.memory_space<vmem>>, vector<1x16x32xf32>
    %1 = vector.shape_cast %0 : vector<1x16x32xf32> to vector<16x32xf32>
    %c0_2 = arith.constant 0 : index
    %c0_3 = arith.constant 0 : index
    %2 = vector.load %arg2[%c0_2, %c0_3] : memref<32x96xf32, #tpu.memory_space<vmem>>, vector<32x32xf32>
    %cst = arith.constant dense<0.000000e+00> : vector<16x32xf32>
    %3 = tpu.matmul %1, %2, %cst {dimension_numbers = #tpu.dot_dimension_numbers<[1], [0], [0], [1], [0, 0, 1, 1], [], []>} : vector<16x32xf32>, vector<32x32xf32>, vector<16x32xf32> -> vector<16x32xf32>
    %c0_4 = arith.constant 0 : index
    %c0_5 = arith.constant 0 : index
    %4 = vector.load %arg3[%c0_4, %c0_5] : memref<1x96xf32, #tpu.memory_space<vmem>>, vector<1x32xf32>
    %5 = vector.broadcast %4 : vector<1x32xf32> to vector<16x32xf32>
    %6 = arith.addf %3, %5 : vector<16x32xf32>
    %c0_6 = arith.constant 0 : index
    %c32 = arith.constant 32 : index
    %7 = vector.load %arg2[%c0_6, %c32] : memref<32x96xf32, #tpu.memory_space<vmem>>, vector<32x64xf32>
    %cst_7 = arith.constant dense<0.000000e+00> : vector<16x64xf32>
    %8 = tpu.matmul %1, %7, %cst_7 {dimension_numbers = #tpu.dot_dimension_numbers<[1], [0], [0], [1], [0, 0, 1, 1], [], []>} : vector<16x32xf32>, vector<32x64xf32>, vector<16x64xf32> -> vector<16x64xf32>
    %c0_8 = arith.constant 0 : index
    %c32_9 = arith.constant 32 : index
    %9 = vector.load %arg3[%c0_8, %c32_9] : memref<1x96xf32, #tpu.memory_space<vmem>>, vector<1x64xf32>
    %10 = vector.broadcast %9 : vector<1x64xf32> to vector<16x64xf32>
    %11 = arith.addf %8, %10 : vector<16x64xf32>
    %c0_10 = arith.constant 0 : index
    %c0_11 = arith.constant 0 : index
    %c0_12 = arith.constant 0 : index
    %12 = vector.load %arg4[%c0_10, %c0_11, %c0_12] : memref<1x16x32xf32, #tpu.memory_space<vmem>>, vector<1x16x32xf32>
    %13 = vector.shape_cast %12 : vector<1x16x32xf32> to vector<16x32xf32>
    %14 = vector.shape_cast %6 : vector<16x32xf32> to vector<1x16x32xf32>
    tpu.vector_store %arg4[%c0_10, %c0_11, %c0_12], %14 {strides = array<i32>} : memref<1x16x32xf32, #tpu.memory_space<vmem>>, vector<1x16x32xf32>,
    %c0_13 = arith.constant 0 : index
    %c0_14 = arith.constant 0 : index
    %c0_15 = arith.constant 0 : index
    %15 = vector.load %arg5[%c0_13, %c0_14, %c0_15] : memref<1x16x64xf32, #tpu.memory_space<vmem>>, vector<1x16x64xf32>
    %16 = vector.shape_cast %15 : vector<1x16x64xf32> to vector<16x64xf32>
    %17 = vector.shape_cast %11 : vector<16x64xf32> to vector<1x16x64xf32>
    tpu.vector_store %arg5[%c0_13, %c0_14, %c0_15], %17 {strides = array<i32>} : memref<1x16x64xf32, #tpu.memory_space<vmem>>, vector<1x16x64xf32>,
    return
  }
  func.func @transform_0(%arg0: i32) -> (i32, i32, i32) {
    %c0_i32 = arith.constant 0 : i32
    %c0_i32_0 = arith.constant 0 : i32
    %c0_i32_1 = arith.constant 0 : i32
    return %arg0, %c0_i32, %c0_i32_0 : i32, i32, i32
  }
  func.func @transform_1(%arg0: i32) -> (i32, i32) {
    %c0_i32 = arith.constant 0 : i32
    %c0_i32_0 = arith.constant 0 : i32
    %c0_i32_1 = arith.constant 0 : i32
    return %c0_i32, %c0_i32_0 : i32, i32
  }
  func.func @transform_2(%arg0: i32) -> (i32, i32) {
    %c0_i32 = arith.constant 0 : i32
    %c0_i32_0 = arith.constant 0 : i32
    %c0_i32_1 = arith.constant 0 : i32
    return %c0_i32, %c0_i32_0 : i32, i32
  }
  func.func @transform_3(%arg0: i32) -> (i32, i32, i32) {
    %c0_i32 = arith.constant 0 : i32
    %c0_i32_0 = arith.constant 0 : i32
    %c0_i32_1 = arith.constant 0 : i32
    return %arg0, %c0_i32, %c0_i32_0 : i32, i32, i32
  }
  func.func @transform_4(%arg0: i32) -> (i32, i32, i32) {
    %c0_i32 = arith.constant 0 : i32
    %c0_i32_0 = arith.constant 0 : i32
    %c0_i32_1 = arith.constant 0 : i32
    return %arg0, %c0_i32, %c0_i32_0 : i32, i32, i32
  }
}

</mosaic_0001>

<bundles_post_ra>
// kernel: tpu_custom_call.1
= control target key start
LH: loop header
LB: loop body
LE: loop exit
PB: predicated region body
PF: predicated region fallthrough
CT: control target
= control target key end

     0   :  { %10 = vsyncpa [#allocation3], 0  ;;  %s977_s0 = inlined_call_operand.hbm [shape: f32[2,16,32], index: 0, kind: input, shape index: {}]   ;;  %s978_s1 = inlined_call_operand.hbm [shape: f32[32,96], index: 1, kind: input, shape index: {}]   ;;  %s979_s2 = inlined_call_operand.vmem [shape: f32[1,96], index: 2, kind: input, shape index: {}]   ;;  %s980_s3 = inlined_call_operand.hbm [shape: f32[2,16,32], index: 3, kind: output, shape index: {0}]   ;;  %s981_s4 = inlined_call_operand.hbm [shape: f32[2,16,64], index: 4, kind: output, shape index: {1}]  }
   0x1   :  { %12 = vsyncpa [#allocation3 + $0x1], 0 }
   0x2   :  { %13 = vsyncpa [#allocation6], 0 }
   0x3   :  { %14 = vsyncpa [#allocation4], 0 }
   0x4   :  { %16 = vsyncpa [#allocation4 + $0x1], 0 }
   0x5   :  { %17 = vsyncpa [#allocation9], 0 }
   0x6   :  { %19 = vsyncpa [#allocation9 + $0x1], 0  ;;  %s795_s15 = smov 0   ;;  %s797_s16 = smov 0  }
   0x7   :  { %s799_s17 = smov 0   ;;  %s801_s18 = smov 0  }
   0x8 LB: > { %s816_s19 = sadd.s32 4294967295, %s762_s18   ;;  %s487_s20 = sadd.s32 4294967294, %s762_s18   ;;  %s762_s18 = sphi %s801_s18, %s991_s18   ;;  %s758_s17 = sphi %s799_s17, %s990_s17   ;;  %s754_s16 = sphi %s797_s16, %s989_s16   ;;  %s750_s15 = sphi %s795_s15, %s988_s15  }
   0x9   : > { %p45_p0 = scmp.ne.s32.totalorder %s754_s16, %s750_s15  ;;  %p46_p1 = scmp.eq.s32.totalorder %s816_s19, 0 }
   0xa   : > { %p111_p2 = scmp.eq.s32.totalorder %s816_s19, 1  ;;  %p117_p3 = scmp.eq.s32.totalorder %s487_s20, 1 }
   0xb   : > { %p825_p4 = por %p46_p1, %p45_p0  ;;  %p488_p5 = scmp.ge.s32.totalorder %s762_s18, 1 }
   0xc   : > { %p830_p6 = por %p117_p3, %p45_p0  ;;  %p150_p7 = scmp.lt.s32.totalorder %s762_s18, 3 }
   0xd   : > { %s161_s25 = sshll.u32 %s978_s1, 4  ;;  %s764_s27 = smov [#allocation5]   ;;  %s162_s25 = int_to_ptr.hbm [resolvable:$true] %s161_s25 }
   0xe   : > { %p838_p8 = pnand %p488_p5, %p150_p7  ;;  %s163_s28 = sshll.u32 %s764_s27, 4  ;;  %s164_s28 = int_to_ptr.vmem [resolvable:$true] %s163_s28 }
   0xf   : > { %s848_s29 = sadd.s32 1, %s762_s18   ;;  %s765_s30 = smov 128  }
  0x10   : > { %p532_p9 = pneg %p838_p8  ;;  %s766_s5 = smov 8  }
  0x11   : > { %s29_s6 = ssub.s32 %s762_s18, %s848_s29  ;;  %s32_s7 = sadd.s32 1, %s758_s17 }
  0x12   : > { %p533_p10 = pnand %p532_p9, %p46_p1  ;;  %p30_p12 = scmp.eq.s32.totalorder %s29_s6, 0 }
  0x13   : > { %p39_p13 = scmp.ne.s32.totalorder %s758_s17, %s754_s16  ;;  %p40_p0 = scmp.eq.s32.totalorder %s762_s18, 0 }
  0x14   : > { %535 = dma.hbm_to_vmem [thread:$0]  (!%p533_p10), %s162_s25, 512, %s164_s28, [#allocation6], %s765_s30, %s765_s30, %s766_s5  }
  0x15   : > { %s860_s8 = scalar_select %p30_p12, %s758_s17, %s32_s7  }
  0x16   : > { %p864_p3 = por %p111_p2, %p39_p13  ;;  %p548_p5 = scmp.lt.s32.totalorder %s762_s18, 2 }
  0x17   : > { %s180_s10 = sand.u32 1, %s758_s17   ;;  %s511_s11 = sshll.u32 %s762_s18, 4 }
  0x18   : > { %p41_p7 = por %p40_p0, %p39_p13  ;;  %s491_s12 = sshll.u32 %s180_s10, 4 }
  0x19   : > { %s189_s20 = scalar_lea.hbm %s977_s0, %s511_s11  ;;  %s184_s24 = scalar_lea.vmem [#allocation2], %s491_s12 }
  0x1a   : > { %s190_s23 = sshll.u32 %s189_s20, 4  ;;  %s192_s25 = sshll.u32 %s184_s24, 4  ;;  %s191_s23 = int_to_ptr.hbm [resolvable:$true] %s190_s23  ;;  %s193_s25 = int_to_ptr.vmem [resolvable:$true] %s192_s25 }
  0x1b   : > { %p874_p9 = pnand %p548_p5, %p41_p7  ;;  %s181_s28 = scalar_lea.sflag [#allocation3], %s180_s10 }
  0x1c   : > { %s630_s6 = sshra.s32 %s191_s23, 4  ;;  %s637_s12 = scalar_lea.hbm %s977_s0, 32  ;;  %s631_s6 = int_to_ptr.hbm [resolvable:$true] %s630_s6 }
  0x1d   : > { %s632_s7 = scalar_lea.hbm %s631_s6, 16  ;;  %p634_p10 = pneg %p874_p9 }
  0x1e   : > { %p633_p2 = scmp.ne.s32.totalorder %s631_s6, %s632_s7  ;;  %p638_p0 = scmp.lt.s32.totalorder %s631_s6, %s977_s0 }
  0x1f   : > { %p639_p5 = scmp.lt.s32.totalorder %s637_s12, %s632_s7 }
  0x20   : > { %p635_p12 = pnand %p634_p10, %p633_p2 }
  0x21   : > { %p640_p7 = por %p639_p5, %p638_p0 }
  0x22   : > { %p636_p13 = pneg %p635_p12 }
  0x24   : > { %p641_p11 = pnand %p640_p7, %p636_p13 }
  0x26   : > { %644 = shalt.err (!%p641_p11)
}
  0x27   : > { %539 = dma.hbm_to_vmem [thread:$0]  (!%p874_p9), %s191_s23, 256, %s193_s25, %s181_s28, %s765_s30, %s765_s30, %s766_s5  }
  0x28   : > { %204 = sbr.rel (%p838_p8) target bundleno = 316 (0x13c), region = 32  ;;  %s894_s10 = sand.u32 (!%p838_p8), 1, %s754_s16  }
  0x29   : > { %s897_s24 = sshll.u32 (!%p838_p8), %s894_s10, 4  ;;  %s207_s6 = scalar_lea.sflag (!%p838_p8), [#allocation3], %s894_s10 }
  0x2a   : > { %s210_s7 = scalar_lea.vmem (!%p838_p8), [#allocation2], %s897_s24 }
  0x2d   : > { %733 = dma.done.wait (%p825_p4), %s207_s6, 256  }
  0x2e   : > { %735 = vsyncadd (%p825_p4), %s207_s6, 4294967040 }
  0x2f   : > { %737 = dma.done.wait (%p46_p1), [#allocation6], 512  }
  0x30   : > { %739 = vsyncadd (%p46_p1), [#allocation6], 4294966784  ;;  %v250_v0 = vld [vmem:[#allocation5 + $0x10] sm:$0xff]  ;;  %v251_v1 = vld [vmem:[#allocation5 + $0x18] sm:$0xff]  ;;  %s767_s26 = smov 96   ;;  %vm256_vm0 = vcmask 261120  }
  0x31   : > { %v589_v2 = vpack.i.bf16 %v250_v0, %v251_v1  ;;  %514 = vmatpush.msra.mxu2 %v251_v1  ;;  %275 = vmatpush.msra.mxu0 %v251_v1  ;;  %v248_v3 = vld [vmem:[#allocation5] sm:$0xff]  ;;  %v249_v4 = vld [vmem:[#allocation5 + $0x8] sm:$0xff]  ;;  %s512_s5 = sshll.u32 %s816_s19, 4  ;;  %s238_s28 = scalar_lea.vmem [#allocation7], %s897_s24 }
  0x32   : > { %v594_v5 = vpack.i.bf16 %v248_v3, %v249_v4  ;;  %v247_v6 = vld [vmem:[%s210_s7 + $0x8] sm:$0xff]  ;;  %v246_v7 = vld [vmem:[%s210_s7] sm:$0xff]  ;;  %s350_s27 = scalar_lea.hbm %s980_s3, %s512_s5  ;;  %s351_s11 = sshll.u32 %s238_s28, 4  ;;  %s352_s11 = int_to_ptr.vmem [resolvable:$true] %s351_s11 }
  0x33   : > { %590 = vrot.lane.b32.xlu0 %v589_v2, %s767_s26  ;;  %515 = vmatpush.msra.mxu2 %v250_v0  ;;  %v599_v8 = vld [vmem:[%s979_s2] ss:$0 sm:$0xff]  ;;  %s353_s13 = sshll.u32 %s350_s27, 4  ;;  %s334_s12 = scalar_lea.sflag [#allocation4], %s894_s10  ;;  %s354_s13 = int_to_ptr.hbm [resolvable:$true] %s353_s13 }
  0x34   : > { %276 = vmatpush.msra.mxu0 %v250_v0  ;;  %302 = vrot.lane.b32.xlu1 %v599_v8, %s767_s26  ;;  %s674_s14 = sshra.s32 %s354_s13, 4  ;;  %s675_s14 = int_to_ptr.hbm [resolvable:$true] %s674_s14 }
  0x35   : > { %516 = vmatpush.msra.mxu2 %v249_v4  ;;  %s676_s20 = scalar_lea.hbm %s675_s14, 16  ;;  %p681_p11 = scmp.lt.s32.totalorder %s675_s14, %s980_s3 }
  0x36   : > { %277 = vmatpush.msra.mxu0 %v249_v4  ;;  %p677_p1 = scmp.ne.s32.totalorder %s675_s14, %s676_s20 }
  0x37   : > { %517 = vmatpush.msra.mxu2 %v248_v3 }
  0x38   : > { %278 = vmatpush.msra.mxu0 %v248_v3  ;;  %500 = vmatmul.msk.f32.vlgmr.msra.gmra.mxu2 %vm256_vm0, %v247_v6  ;;  %p678_p4 = pnand %p677_p1, %p864_p3 }
  0x39   : > { %499 = vmatmul.msk.f32.vlgmr.msra.gmra.mxu0 %vm256_vm0, %v246_v7 }
  0x3a   : > { %p679_p8 = pneg %p678_p4 }
  0x3b   : > { %595 = vrot.lane.b32.xlu0 %v594_v5, %s767_s26  ;;  %s680_s26 = scalar_lea.hbm %s980_s3, 32 }
  0x3c   : > { %p682_p9 = scmp.lt.s32.totalorder %s680_s26, %s676_s20 }
  0x3e   : > { %p683_p2 = por %p682_p9, %p681_p11 }
  0x40   : > { %p684_p10 = pnand %p683_p2, %p679_p8 }
  0xa5   : > { %v591_v9 = vpop.permute.xlu0 %590 }
  0xa6   : > { %v592_v10 = vunpack.i.l.bf16 %v591_v9  ;;  %v593_v11 = vunpack.i.h.bf16 %v591_v9 }
  0xa8   : > { %317 = vmatpush.msra.mxu1 %v592_v10  ;;  %518 = vmatpush.msra.mxu3 %v592_v10 }
  0xaa   : > { %318 = vmatpush.msra.mxu1 %v593_v11  ;;  %519 = vmatpush.msra.mxu3 %v593_v11 }
  0xad   : > { %v596_v12 = vpop.permute.xlu0 %595 }
  0xae   : > { %v597_v13 = vunpack.i.l.bf16 %v596_v12  ;;  %v598_v14 = vunpack.i.h.bf16 %v596_v12 }
  0xb0   : > { %319 = vmatpush.msra.mxu1 %v597_v13  ;;  %520 = vmatpush.msra.mxu3 %v597_v13 }
  0xb2   : > { %320 = vmatpush.msra.mxu1 %v598_v14  ;;  %521 = vmatpush.msra.mxu3 %v598_v14 }
  0xb3   : > { %502 = vmatmul.msk.f32.vlgmr.msra.gmra.mxu3 %vm256_vm0, %v247_v6  ;;  %501 = vmatmul.msk.f32.vlgmr.msra.gmra.mxu1 %vm256_vm0, %v246_v7 }
  0xb6   : > { %v280_v15 = vpop.f32.mrf.mxu0 }
  0xb7   : > { %v281_v16 = vadd.f32 %v599_v8, %v280_v15 }
  0xb9   : > { %328 = vst.msk [vmem:[%s238_s28] sm:$0xff] %vm256_vm0, %v281_v16 }
  0xbb   : > { %v283_v17 = vpop.f32.mrf.mxu2 }
  0xbc   : > { %v284_v18 = vadd.f32 %v599_v8, %v283_v17 }
  0xbe   : > { %329 = vst.msk [vmem:[%s238_s28 + $0x8] sm:$0xff] %vm256_vm0, %v284_v18 }
  0xbf   : > { %687 = shalt.err (!%p684_p10)
}
  0xc0   : > { %s768_s23 = smov 128   ;;  %s769_s25 = smov 8   ;;  %v303_v19 = vpop.permute.xlu1 %302  ;;  %vm330_vm1 = vcmask 523264  }
  0xc1   : > { %528 = dma.vmem_to_hbm [thread:$0]  (%p864_p3), %s352_s11, 256, %s354_s13, %s334_s12, %s768_s23, %s768_s23, %s769_s25  }
  0xc2   : > { %s367_s14 = scalar_lea.hbm %s981_s4, %s512_s5  ;;  %s245_s20 = scalar_lea.vmem [#allocation8], %s897_s24 }
  0xc3   : > { %s368_s6 = sshll.u32 %s245_s20, 4  ;;  %s370_s7 = sshll.u32 %s367_s14, 4  ;;  %s369_s6 = int_to_ptr.vmem [resolvable:$true] %s368_s6  ;;  %s371_s7 = int_to_ptr.hbm [resolvable:$true] %s370_s7 }
  0xc4   : > { %s339_s11 = scalar_lea.sflag [#allocation9], %s894_s10  ;;  %s702_s13 = sshra.s32 %s371_s7, 4  ;;  %s703_s13 = int_to_ptr.hbm [resolvable:$true] %s702_s13 }
  0xc5   : > { %s704_s12 = scalar_lea.hbm %s703_s13, 16  ;;  %s708_s24 = scalar_lea.hbm %s981_s4, 32 }
  0xc6   : > { %p705_p12 = scmp.ne.s32.totalorder %s703_s13, %s704_s12  ;;  %p709_p5 = scmp.lt.s32.totalorder %s703_s13, %s981_s4 }
  0xc7   : > { %p710_p7 = scmp.lt.s32.totalorder %s708_s24, %s704_s12 }
  0xc8   : > { %p706_p13 = pnand %p705_p12, %p864_p3 }
  0xc9   : > { %p711_p1 = por %p710_p7, %p709_p5 }
  0xca   : > { %p707_p0 = pneg %p706_p13 }
  0xcc   : > { %p712_p4 = pnand %p711_p1, %p707_p0 }
 0x130   : > { %v322_v20 = vpop.f32.mrf.mxu1 }
 0x131   : > { %v323_v21 = vadd.f32 %v322_v20, %v303_v19 }
 0x133   : > { %331 = vst.msk [vmem:[%s245_s20] sm:$0xff] %vm330_vm1, %v323_v21 }
 0x136   : > { %v325_v22 = vpop.f32.mrf.mxu3 }
 0x137   : > { %v326_v23 = vadd.f32 %v325_v22, %v303_v19 }
 0x139   : > { %332 = vst.msk [vmem:[%s245_s20 + $0x8] sm:$0xff] %vm330_vm1, %v326_v23 }
 0x13a   : > { %715 = shalt.err (!%p712_p4)
}
 0x13b   : > { %529 = dma.vmem_to_hbm [thread:$0]  (%p864_p3), %s369_s6, 256, %s371_s7, %s339_s11, %s768_s23, %s768_s23, %s769_s25  }
 0x13c PF: > { %s385_s10 = sand.u32 1, %s750_s15   ;;  %p987_p8 = scmp.ge.s32.totalorder %s762_s18, 2 }
 0x13d   : > { %s386_s30 = scalar_lea.sflag [#allocation4], %s385_s10 }
 0x13e   : > { %p541_p11 = pnand %p987_p8, %p830_p6 }
 0x140   : > { %p542_p9 = pneg %p541_p11 }
 0x142   : > { %741 = dma.done.wait (%p542_p9), %s386_s30, 256  }
 0x143   : > { %743 = vsyncadd (%p542_p9), %s386_s30, 4294967040  ;;  %s396_s27 = scalar_lea.sflag [#allocation9], %s385_s10 }
 0x144   : > { %745 = dma.done.wait (%p542_p9), %s396_s27, 256  }
 0x145   : > { %747 = vsyncadd (%p542_p9), %s396_s27, 4294967040  ;;  %p22_p3 = scmp.ge.s32.totalorder %s848_s29, 4   ;;  %s988_s15 = smov %s754_s16 }
 0x146   : > { %s989_s16 = smov %s758_s17  ;;  %s990_s17 = smov %s860_s8 }
 0x147   : > { %s991_s18 = smov %s848_s29  ;;  %24 = sbr.rel (!%p22_p3) target bundleno = 8 (0x8), region = 98 }
 0x14c   :  { %402 = vsyncpa [#allocation3], 1 }
 0x14d   :  { %404 = vsyncpa [#allocation3 + $0x1], 1 }
 0x14e   :  { %405 = vsyncpa [#allocation6], 1 }
 0x14f   :  { %406 = vsyncpa [#allocation4], 1 }
 0x150   :  { %408 = vsyncpa [#allocation4 + $0x1], 1 }
 0x151   :  { %409 = vsyncpa [#allocation9], 1 }
 0x152   :  { %411 = vsyncpa [#allocation9 + $0x1], 1 }

</bundles_post_ra>
